<compile_context>
chip_gen: v7x
topology: tpu7x:2x2x1
jax: 0.10.0
libtpu: 0.0.40
codegen_flags: <defaults>
</compile_context>

<pallas_src>
import jax
import jax.numpy as jnp
from jax.experimental import pallas as pl
from jax.experimental.pallas import tpu as pltpu

# SELU constants (match torch.nn.SELU)
_SELU_ALPHA = 1.6732632423543772
_SELU_SCALE = 1.0507009873554805
_BN_EPS = 1e-3

_TN_MAX = 2048                       # out_fc column tile (multiple of 128), sized for v7x 64 MiB VMEM
_VMEM_LIMIT = 32 * 1024 * 1024       # explicit scoped-VMEM budget, safe on v5e/v6e/v7x


def _selu(x):
    return _SELU_SCALE * jnp.where(x > 0, x, _SELU_ALPHA * (jnp.exp(x) - 1.0))


def _batchnorm_train(x, gamma, beta):
    # BatchNorm1d training-mode forward with one-pass batch statistics:
    # sum(x) and sum(x*x) computed in a single sweep; var = E[x^2] - mean^2.
    inv_n = 1.0 / x.shape[0]
    mean = jnp.sum(x, axis=0, keepdims=True) * inv_n
    ex2 = jnp.sum(x * x, axis=0, keepdims=True) * inv_n
    var = jnp.maximum(ex2 - mean * mean, 0.0)  # guard tiny negative from cancellation
    return (x - mean) * jax.lax.rsqrt(var + _BN_EPS) * gamma + beta


def _mlp_kernel(
    z_ref, bat_ref,
    wb_ref, bb_ref, gb_ref, betab_ref,
    w4z_ref, w4b_ref, b4_ref, g4_ref, beta4_ref,
    w5_ref, b5_ref, g5_ref, beta5_ref,
    dec_ref,
):
    # --- batch branch: fcb -> bnb -> SELU (tiny, stays in f32) ---
    b = jnp.dot(bat_ref[...], wb_ref[...], preferred_element_type=jnp.float32) + bb_ref[...]
    b = _selu(_batchnorm_train(b, gb_ref[...], betab_ref[...]))

    # --- fc4 on cat([z, b], dim=1): split matmul (identical math to concat) ---
    dec = (
        jnp.dot(z_ref[...], w4z_ref[...], preferred_element_type=jnp.float32)
        + jnp.dot(b, w4b_ref[...], preferred_element_type=jnp.float32)
        + b4_ref[...]
    )
    dec = _selu(_batchnorm_train(dec, g4_ref[...], beta4_ref[...]))

    # --- fc5 -> bn5 -> SELU (bf16 matmul inputs, f32 accumulate / BN / SELU) ---
    dec = (
        jnp.dot(dec.astype(jnp.bfloat16), w5_ref[...], preferred_element_type=jnp.float32)
        + b5_ref[...]
    )
    dec = _selu(_batchnorm_train(dec, g5_ref[...], beta5_ref[...]))

    dec_ref[...] = dec.astype(dec_ref.dtype)


def _out_fc_kernel(dec_ref, wo_ref, bo_ref, out_ref):
    # out_fc -> ReLU on one (B, TN) output column tile.
    acc = jnp.dot(dec_ref[...], wo_ref[...], preferred_element_type=jnp.float32)
    out_ref[...] = jnp.maximum(acc + bo_ref[...], 0.0)


def decoder_forward(z, batch, params, *, tn_max=_TN_MAX):
    """Decoder forward pass as two Pallas kernels (fused MLP + tiled out_fc)."""
    B = z.shape[0]
    f1_dim = params["w5"].shape[1]
    n_genes = params["wo"].shape[1]

    # Big matmul weights held in bf16 (in production, store them in bf16 in HBM).
    w5_bf16 = params["w5"].astype(jnp.bfloat16)
    wo_bf16 = params["wo"].astype(jnp.bfloat16)

    # ---------------- Stage 1: fused MLP producing dec (B, f1_dim) ----------------
    mlp_inputs = (
        z, batch,
        params["wb"], params["bb"], params["gb"], params["betab"],
        params["w4z"], params["w4b"], params["b4"], params["g4"], params["beta4"],
        w5_bf16, params["b5"], params["g5"], params["beta5"],
    )

    def full_spec(x):
        return pl.BlockSpec(x.shape, lambda i: (0, 0))

    dec = pl.pallas_call(
        _mlp_kernel,
        out_shape=jax.ShapeDtypeStruct((B, f1_dim), jnp.bfloat16),
        grid=(1,),
        in_specs=[full_spec(x) for x in mlp_inputs],
        out_specs=pl.BlockSpec((B, f1_dim), lambda i: (0, 0)),
        compiler_params=pltpu.CompilerParams(
            dimension_semantics=("arbitrary",),
            vmem_limit_bytes=_VMEM_LIMIT,
        ),
    )(*mlp_inputs)

    # ---------------- Stage 2: out_fc + ReLU, tiled & pipelined over n_genes ----------------
    tn_max = max(128, (int(tn_max) // 128) * 128)
    tn = min(tn_max, pl.cdiv(n_genes, 128) * 128)   # lane-dense tile, multiple of 128
    n_pad = pl.cdiv(n_genes, tn) * tn               # pad column count to a multiple of tn

    if n_pad != n_genes:
        wo_p = jnp.pad(wo_bf16, ((0, 0), (0, n_pad - n_genes)))
        bo_p = jnp.pad(params["bo"], ((0, 0), (0, n_pad - n_genes)))
    else:
        wo_p, bo_p = wo_bf16, params["bo"]

    out = pl.pallas_call(
        _out_fc_kernel,
        out_shape=jax.ShapeDtypeStruct((B, n_pad), jnp.float32),
        grid=(n_pad // tn,),
        in_specs=[
            pl.BlockSpec((B, f1_dim), lambda j: (0, 0)),   # dec: resident across tiles
            pl.BlockSpec((f1_dim, tn), lambda j: (0, j)),  # wo: streamed column tiles
            pl.BlockSpec((1, tn), lambda j: (0, j)),       # bo
        ],
        out_specs=pl.BlockSpec((B, tn), lambda j: (0, j)),
        compiler_params=pltpu.CompilerParams(
            dimension_semantics=("parallel",),             # shard column tiles across TCs (v7x)
            vmem_limit_bytes=_VMEM_LIMIT,
        ),
    )(dec, wo_p, bo_p)

    return out[:, :n_genes] if n_pad != n_genes else out


# ---------------------------------------------------------------------------
# References (pure JAX) for correctness checking.
# ---------------------------------------------------------------------------
def _bn_ref_f32(x, gamma, beta):
    mean = jnp.mean(x, axis=0, keepdims=True)
    var = jnp.mean((x - mean) ** 2, axis=0, keepdims=True)
    return (x - mean) * jax.lax.rsqrt(var + _BN_EPS) * gamma + beta


def decoder_reference_f32(z, batch, params):
    """Torch-faithful full-f32 math (BN training mode, biased variance)."""
    b = _selu(_bn_ref_f32(batch @ params["wb"] + params["bb"], params["gb"], params["betab"]))
    n_z = jnp.concatenate([z, b], axis=1)
    w4 = jnp.concatenate([params["w4z"], params["w4b"]], axis=0)
    dec = _selu(_bn_ref_f32(n_z @ w4 + params["b4"], params["g4"], params["beta4"]))
    dec = _selu(_bn_ref_f32(dec @ params["w5"] + params["b5"], params["g5"], params["beta5"]))
    return jnp.maximum(dec @ params["wo"] + params["bo"], 0.0)


def decoder_reference_matched(z, batch, params):
    """Reference mirroring the kernel's precision choices (bf16 matmul inputs on fc5/out_fc)."""
    b = _selu(_batchnorm_train(batch @ params["wb"] + params["bb"], params["gb"], params["betab"]))
    dec = z @ params["w4z"] + b @ params["w4b"] + params["b4"]
    dec = _selu(_batchnorm_train(dec, params["g4"], params["beta4"]))
    dec = jnp.dot(dec.astype(jnp.bfloat16), params["w5"].astype(jnp.bfloat16),
                  preferred_element_type=jnp.float32) + params["b5"]
    dec = _selu(_batchnorm_train(dec, params["g5"], params["beta5"]))
    dec = dec.astype(jnp.bfloat16)
    out = jnp.dot(dec, params["wo"].astype(jnp.bfloat16),
                  preferred_element_type=jnp.float32) + params["bo"]
    return jnp.maximum(out, 0.0)


def init_params(key, n_genes, f1_dim, f2_dim, enc_dim, n_batch):
    """Deterministic synthetic parameters (PyTorch-style fan-in uniform)."""
    keys = jax.random.split(key, 16)

    def lin(kw, kb, fan_in, fan_out):
        bound = 1.0 / jnp.sqrt(float(fan_in))
        w = jax.random.uniform(kw, (fan_in, fan_out), jnp.float32, -bound, bound)
        b = jax.random.uniform(kb, (1, fan_out), jnp.float32, -bound, bound)
        return w, b

    wb, bb = lin(keys[0], keys[1], n_batch, n_batch)
    w4, b4 = lin(keys[2], keys[3], enc_dim + n_batch, f2_dim)
    w5, b5 = lin(keys[4], keys[5], f2_dim, f1_dim)
    wo, bo = lin(keys[6], keys[7], f1_dim, n_genes)

    def bn_params(kg, kb_, dim):
        g = jax.random.uniform(kg, (1, dim), jnp.float32, 0.5, 1.5)
        be = jax.random.uniform(kb_, (1, dim), jnp.float32, -0.1, 0.1)
        return g, be

    gb, betab = bn_params(keys[8], keys[9], n_batch)
    g4, beta4 = bn_params(keys[10], keys[11], f2_dim)
    g5, beta5 = bn_params(keys[12], keys[13], f1_dim)

    return {
        "wb": wb, "bb": bb, "gb": gb, "betab": betab,
        "w4z": w4[:enc_dim], "w4b": w4[enc_dim:], "b4": b4, "g4": g4, "beta4": beta4,
        "w5": w5, "b5": b5, "g5": g5, "beta5": beta5,
        "wo": wo, "bo": bo,
    }


if __name__ == "__main__":
    # Small shapes consistent with the module's constructor.  n_genes=300 and
    # tn_max=128 exercise the column tiling + padding path (3 output tiles).
    B, n_genes, f1_dim, f2_dim, enc_dim, n_batch = 8, 300, 64, 32, 16, 8

    key = jax.random.PRNGKey(0)
    k_params, k_z, k_bat = jax.random.split(key, 3)

    params = init_params(k_params, n_genes, f1_dim, f2_dim, enc_dim, n_batch)
    z = jax.random.normal(k_z, (B, enc_dim), jnp.float32)
    batch = jax.nn.one_hot(
        jax.random.randint(k_bat, (B,), 0, n_batch), n_batch, dtype=jnp.float32
    )

    out = decoder_forward(z, batch, params, tn_max=128)
    out = jax.block_until_ready(out)
    assert out.shape == (B, n_genes)

    # Tight check against a reference that mirrors the kernel's precision choices.
    ref_matched = decoder_reference_matched(z, batch, params)
    assert jnp.allclose(out, ref_matched, atol=2e-3, rtol=2e-3), "mismatch vs matched reference"

    # Loose check against the full-f32 PyTorch-faithful math (bf16 weights are an
    # intentional precision/perf trade on the two big matmuls).
    ref_f32 = decoder_reference_f32(z, batch, params)
    assert jnp.allclose(out, ref_f32, atol=1e-1, rtol=1e-1), "mismatch vs f32 reference"

    print("KERNEL_OK")
</pallas_src>

<mosaic_0001>
module attributes {stable_mosaic.version = 11 : i64} {
  func.func @_mlp_kernel(%arg0: i32, %arg1: memref<8x16xf32, #tpu.memory_space<vmem>>, %arg2: memref<8x8xf32, #tpu.memory_space<vmem>>, %arg3: memref<8x8xf32, #tpu.memory_space<vmem>>, %arg4: memref<1x8xf32, #tpu.memory_space<vmem>>, %arg5: memref<1x8xf32, #tpu.memory_space<vmem>>, %arg6: memref<1x8xf32, #tpu.memory_space<vmem>>, %arg7: memref<16x32xf32, #tpu.memory_space<vmem>>, %arg8: memref<8x32xf32, #tpu.memory_space<vmem>>, %arg9: memref<1x32xf32, #tpu.memory_space<vmem>>, %arg10: memref<1x32xf32, #tpu.memory_space<vmem>>, %arg11: memref<1x32xf32, #tpu.memory_space<vmem>>, %arg12: memref<32x64xbf16, #tpu.memory_space<vmem>>, %arg13: memref<1x64xf32, #tpu.memory_space<vmem>>, %arg14: memref<1x64xf32, #tpu.memory_space<vmem>>, %arg15: memref<1x64xf32, #tpu.memory_space<vmem>>, %arg16: memref<8x64xbf16, #tpu.memory_space<vmem>>) attributes {dimension_semantics = [#tpu.dimension_semantics<arbitrary>], iteration_bounds = array<i64: 1>, scalar_prefetch = 0 : i64, scratch_operands = 0 : i64, tpu.core_type = #tpu.core_type<tc>, window_params = [{pipeline_mode = #tpu.pipeline_mode<synchronous>, transform_indices = @transform_0, window_bounds = array<i64: 8, 16>}, {pipeline_mode = #tpu.pipeline_mode<synchronous>, transform_indices = @transform_1, window_bounds = array<i64: 8, 8>}, {pipeline_mode = #tpu.pipeline_mode<synchronous>, transform_indices = @transform_2, window_bounds = array<i64: 8, 8>}, {pipeline_mode = #tpu.pipeline_mode<synchronous>, transform_indices = @transform_3, window_bounds = array<i64: 1, 8>}, {pipeline_mode = #tpu.pipeline_mode<synchronous>, transform_indices = @transform_4, window_bounds = array<i64: 1, 8>}, {pipeline_mode = #tpu.pipeline_mode<synchronous>, transform_indices = @transform_5, window_bounds = array<i64: 1, 8>}, {pipeline_mode = #tpu.pipeline_mode<synchronous>, transform_indices = @transform_6, window_bounds = array<i64: 16, 32>}, {pipeline_mode = #tpu.pipeline_mode<synchronous>, transform_indices = @transform_7, window_bounds = array<i64: 8, 32>}, {pipeline_mode = #tpu.pipeline_mode<synchronous>, transform_indices = @transform_8, window_bounds = array<i64: 1, 32>}, {pipeline_mode = #tpu.pipeline_mode<synchronous>, transform_indices = @transform_9, window_bounds = array<i64: 1, 32>}, {pipeline_mode = #tpu.pipeline_mode<synchronous>, transform_indices = @transform_10, window_bounds = array<i64: 1, 32>}, {pipeline_mode = #tpu.pipeline_mode<synchronous>, transform_indices = @transform_11, window_bounds = array<i64: 32, 64>}, {pipeline_mode = #tpu.pipeline_mode<synchronous>, transform_indices = @transform_12, window_bounds = array<i64: 1, 64>}, {pipeline_mode = #tpu.pipeline_mode<synchronous>, transform_indices = @transform_13, window_bounds = array<i64: 1, 64>}, {pipeline_mode = #tpu.pipeline_mode<synchronous>, transform_indices = @transform_14, window_bounds = array<i64: 1, 64>}, {pipeline_mode = #tpu.pipeline_mode<synchronous>, transform_indices = @transform_15, window_bounds = array<i64: 8, 64>}]} {
    %c0 = arith.constant 0 : index
    %c0_0 = arith.constant 0 : index
    %0 = vector.load %arg2[%c0, %c0_0] : memref<8x8xf32, #tpu.memory_space<vmem>>, vector<8x8xf32>
    %c0_1 = arith.constant 0 : index
    %c0_2 = arith.constant 0 : index
    %1 = vector.load %arg3[%c0_1, %c0_2] : memref<8x8xf32, #tpu.memory_space<vmem>>, vector<8x8xf32>
    %cst = arith.constant dense<0.000000e+00> : vector<8x8xf32>
    %2 = tpu.matmul %0, %1, %cst {dimension_numbers = #tpu.dot_dimension_numbers<[1], [0], [0], [1], [0, 0, 1, 1], [], []>} : vector<8x8xf32>, vector<8x8xf32>, vector<8x8xf32> -> vector<8x8xf32>
    %c0_3 = arith.constant 0 : index
    %c0_4 = arith.constant 0 : index
    %3 = vector.load %arg4[%c0_3, %c0_4] : memref<1x8xf32, #tpu.memory_space<vmem>>, vector<1x8xf32>
    %4 = vector.broadcast %3 : vector<1x8xf32> to vector<8x8xf32>
    %5 = arith.addf %2, %4 : vector<8x8xf32>
    %c0_5 = arith.constant 0 : index
    %c0_6 = arith.constant 0 : index
    %6 = vector.load %arg5[%c0_5, %c0_6] : memref<1x8xf32, #tpu.memory_space<vmem>>, vector<1x8xf32>
    %c0_7 = arith.constant 0 : index
    %c0_8 = arith.constant 0 : index
    %7 = vector.load %arg6[%c0_7, %c0_8] : memref<1x8xf32, #tpu.memory_space<vmem>>, vector<1x8xf32>
    %cst_9 = arith.constant dense<0.000000e+00> : vector<8xf32>
    %8 = vector.multi_reduction <add>, %5, %cst_9 [0] : vector<8x8xf32> to vector<8xf32>
    %9 = vector.shape_cast %8 : vector<8xf32> to vector<1x8xf32>
    %cst_10 = arith.constant 1.250000e-01 : f32
    %10 = vector.broadcast %cst_10 : f32 to vector<1x8xf32>
    %11 = arith.mulf %9, %10 : vector<1x8xf32>
    %12 = arith.mulf %5, %5 : vector<8x8xf32>
    %cst_11 = arith.constant dense<0.000000e+00> : vector<8xf32>
    %13 = vector.multi_reduction <add>, %12, %cst_11 [0] : vector<8x8xf32> to vector<8xf32>
    %14 = vector.shape_cast %13 : vector<8xf32> to vector<1x8xf32>
    %cst_12 = arith.constant 1.250000e-01 : f32
    %15 = vector.broadcast %cst_12 : f32 to vector<1x8xf32>
    %16 = arith.mulf %14, %15 : vector<1x8xf32>
    %17 = arith.mulf %11, %11 : vector<1x8xf32>
    %18 = arith.subf %16, %17 : vector<1x8xf32>
    %cst_13 = arith.constant 0.000000e+00 : f32
    %19 = vector.broadcast %cst_13 : f32 to vector<1x8xf32>
    %20 = arith.maximumf %18, %19 : vector<1x8xf32>
    %21 = vector.broadcast %11 : vector<1x8xf32> to vector<8x8xf32>
    %22 = arith.subf %5, %21 : vector<8x8xf32>
    %cst_14 = arith.constant 1.000000e-03 : f32
    %23 = vector.broadcast %cst_14 : f32 to vector<1x8xf32>
    %24 = arith.addf %20, %23 : vector<1x8xf32>
    %25 = math.rsqrt %24 : vector<1x8xf32>
    %26 = vector.broadcast %25 : vector<1x8xf32> to vector<8x8xf32>
    %27 = arith.mulf %22, %26 : vector<8x8xf32>
    %28 = vector.broadcast %6 : vector<1x8xf32> to vector<8x8xf32>
    %29 = arith.mulf %27, %28 : vector<8x8xf32>
    %30 = vector.broadcast %7 : vector<1x8xf32> to vector<8x8xf32>
    %31 = arith.addf %29, %30 : vector<8x8xf32>
    %cst_15 = arith.constant 0.000000e+00 : f32
    %32 = vector.broadcast %cst_15 : f32 to vector<8x8xf32>
    %33 = arith.cmpf ogt, %31, %32 : vector<8x8xf32>
    %34 = math.exp %31 : vector<8x8xf32>
    %cst_16 = arith.constant 1.000000e+00 : f32
    %35 = vector.broadcast %cst_16 : f32 to vector<8x8xf32>
    %36 = arith.subf %34, %35 : vector<8x8xf32>
    %cst_17 = arith.constant 1.67326319 : f32
    %37 = vector.broadcast %cst_17 : f32 to vector<8x8xf32>
    %38 = arith.mulf %37, %36 : vector<8x8xf32>
    %39 = arith.select %33, %31, %38 : vector<8x8xi1>, vector<8x8xf32>
    %cst_18 = arith.constant 1.05070102 : f32
    %40 = vector.broadcast %cst_18 : f32 to vector<8x8xf32>
    %41 = arith.mulf %40, %39 : vector<8x8xf32>
    %c0_19 = arith.constant 0 : index
    %c0_20 = arith.constant 0 : index
    %42 = vector.load %arg1[%c0_19, %c0_20] : memref<8x16xf32, #tpu.memory_space<vmem>>, vector<8x16xf32>
    %c0_21 = arith.constant 0 : index
    %c0_22 = arith.constant 0 : index
    %43 = vector.load %arg7[%c0_21, %c0_22] : memref<16x32xf32, #tpu.memory_space<vmem>>, vector<16x32xf32>
    %cst_23 = arith.constant dense<0.000000e+00> : vector<8x32xf32>
    %44 = tpu.matmul %42, %43, %cst_23 {dimension_numbers = #tpu.dot_dimension_numbers<[1], [0], [0], [1], [0, 0, 1, 1], [], []>} : vector<8x16xf32>, vector<16x32xf32>, vector<8x32xf32> -> vector<8x32xf32>
    %c0_24 = arith.constant 0 : index
    %c0_25 = arith.constant 0 : index
    %45 = vector.load %arg8[%c0_24, %c0_25] : memref<8x32xf32, #tpu.memory_space<vmem>>, vector<8x32xf32>
    %cst_26 = arith.constant dense<0.000000e+00> : vector<8x32xf32>
    %46 = tpu.matmul %41, %45, %cst_26 {dimension_numbers = #tpu.dot_dimension_numbers<[1], [0], [0], [1], [0, 0, 1, 1], [], []>} : vector<8x8xf32>, vector<8x32xf32>, vector<8x32xf32> -> vector<8x32xf32>
    %47 = arith.addf %44, %46 : vector<8x32xf32>
    %c0_27 = arith.constant 0 : index
    %c0_28 = arith.constant 0 : index
    %48 = vector.load %arg9[%c0_27, %c0_28] : memref<1x32xf32, #tpu.memory_space<vmem>>, vector<1x32xf32>
    %49 = vector.broadcast %48 : vector<1x32xf32> to vector<8x32xf32>
    %50 = arith.addf %47, %49 : vector<8x32xf32>
    %c0_29 = arith.constant 0 : index
    %c0_30 = arith.constant 0 : index
    %51 = vector.load %arg10[%c0_29, %c0_30] : memref<1x32xf32, #tpu.memory_space<vmem>>, vector<1x32xf32>
    %c0_31 = arith.constant 0 : index
    %c0_32 = arith.constant 0 : index
    %52 = vector.load %arg11[%c0_31, %c0_32] : memref<1x32xf32, #tpu.memory_space<vmem>>, vector<1x32xf32>
    %cst_33 = arith.constant dense<0.000000e+00> : vector<32xf32>
    %53 = vector.multi_reduction <add>, %50, %cst_33 [0] : vector<8x32xf32> to vector<32xf32>
    %54 = vector.shape_cast %53 : vector<32xf32> to vector<1x32xf32>
    %cst_34 = arith.constant 1.250000e-01 : f32
    %55 = vector.broadcast %cst_34 : f32 to vector<1x32xf32>
    %56 = arith.mulf %54, %55 : vector<1x32xf32>
    %57 = arith.mulf %50, %50 : vector<8x32xf32>
    %cst_35 = arith.constant dense<0.000000e+00> : vector<32xf32>
    %58 = vector.multi_reduction <add>, %57, %cst_35 [0] : vector<8x32xf32> to vector<32xf32>
    %59 = vector.shape_cast %58 : vector<32xf32> to vector<1x32xf32>
    %cst_36 = arith.constant 1.250000e-01 : f32
    %60 = vector.broadcast %cst_36 : f32 to vector<1x32xf32>
    %61 = arith.mulf %59, %60 : vector<1x32xf32>
    %62 = arith.mulf %56, %56 : vector<1x32xf32>
    %63 = arith.subf %61, %62 : vector<1x32xf32>
    %cst_37 = arith.constant 0.000000e+00 : f32
    %64 = vector.broadcast %cst_37 : f32 to vector<1x32xf32>
    %65 = arith.maximumf %63, %64 : vector<1x32xf32>
    %66 = vector.broadcast %56 : vector<1x32xf32> to vector<8x32xf32>
    %67 = arith.subf %50, %66 : vector<8x32xf32>
    %cst_38 = arith.constant 1.000000e-03 : f32
    %68 = vector.broadcast %cst_38 : f32 to vector<1x32xf32>
    %69 = arith.addf %65, %68 : vector<1x32xf32>
    %70 = math.rsqrt %69 : vector<1x32xf32>
    %71 = vector.broadcast %70 : vector<1x32xf32> to vector<8x32xf32>
    %72 = arith.mulf %67, %71 : vector<8x32xf32>
    %73 = vector.broadcast %51 : vector<1x32xf32> to vector<8x32xf32>
    %74 = arith.mulf %72, %73 : vector<8x32xf32>
    %75 = vector.broadcast %52 : vector<1x32xf32> to vector<8x32xf32>
    %76 = arith.addf %74, %75 : vector<8x32xf32>
    %cst_39 = arith.constant 0.000000e+00 : f32
    %77 = vector.broadcast %cst_39 : f32 to vector<8x32xf32>
    %78 = arith.cmpf ogt, %76, %77 : vector<8x32xf32>
    %79 = math.exp %76 : vector<8x32xf32>
    %cst_40 = arith.constant 1.000000e+00 : f32
    %80 = vector.broadcast %cst_40 : f32 to vector<8x32xf32>
    %81 = arith.subf %79, %80 : vector<8x32xf32>
    %cst_41 = arith.constant 1.67326319 : f32
    %82 = vector.broadcast %cst_41 : f32 to vector<8x32xf32>
    %83 = arith.mulf %82, %81 : vector<8x32xf32>
    %84 = arith.select %78, %76, %83 : vector<8x32xi1>, vector<8x32xf32>
    %cst_42 = arith.constant 1.05070102 : f32
    %85 = vector.broadcast %cst_42 : f32 to vector<8x32xf32>
    %86 = arith.mulf %85, %84 : vector<8x32xf32>
    %87 = arith.truncf %86 : vector<8x32xf32> to vector<8x32xbf16>
    %c0_43 = arith.constant 0 : index
    %c0_44 = arith.constant 0 : index
    %88 = vector.load %arg12[%c0_43, %c0_44] : memref<32x64xbf16, #tpu.memory_space<vmem>>, vector<32x64xbf16>
    %cst_45 = arith.constant dense<0.000000e+00> : vector<8x64xf32>
    %89 = tpu.matmul %87, %88, %cst_45 {dimension_numbers = #tpu.dot_dimension_numbers<[1], [0], [0], [1], [0, 0, 1, 1], [], []>} : vector<8x32xbf16>, vector<32x64xbf16>, vector<8x64xf32> -> vector<8x64xf32>
    %c0_46 = arith.constant 0 : index
    %c0_47 = arith.constant 0 : index
    %90 = vector.load %arg13[%c0_46, %c0_47] : memref<1x64xf32, #tpu.memory_space<vmem>>, vector<1x64xf32>
    %91 = vector.broadcast %90 : vector<1x64xf32> to vector<8x64xf32>
    %92 = arith.addf %89, %91 : vector<8x64xf32>
    %c0_48 = arith.constant 0 : index
    %c0_49 = arith.constant 0 : index
    %93 = vector.load %arg14[%c0_48, %c0_49] : memref<1x64xf32, #tpu.memory_space<vmem>>, vector<1x64xf32>
    %c0_50 = arith.constant 0 : index
    %c0_51 = arith.constant 0 : index
    %94 = vector.load %arg15[%c0_50, %c0_51] : memref<1x64xf32, #tpu.memory_space<vmem>>, vector<1x64xf32>
    %cst_52 = arith.constant dense<0.000000e+00> : vector<64xf32>
    %95 = vector.multi_reduction <add>, %92, %cst_52 [0] : vector<8x64xf32> to vector<64xf32>
    %96 = vector.shape_cast %95 : vector<64xf32> to vector<1x64xf32>
    %cst_53 = arith.constant 1.250000e-01 : f32
    %97 = vector.broadcast %cst_53 : f32 to vector<1x64xf32>
    %98 = arith.mulf %96, %97 : vector<1x64xf32>
    %99 = arith.mulf %92, %92 : vector<8x64xf32>
    %cst_54 = arith.constant dense<0.000000e+00> : vector<64xf32>
    %100 = vector.multi_reduction <add>, %99, %cst_54 [0] : vector<8x64xf32> to vector<64xf32>
    %101 = vector.shape_cast %100 : vector<64xf32> to vector<1x64xf32>
    %cst_55 = arith.constant 1.250000e-01 : f32
    %102 = vector.broadcast %cst_55 : f32 to vector<1x64xf32>
    %103 = arith.mulf %101, %102 : vector<1x64xf32>
    %104 = arith.mulf %98, %98 : vector<1x64xf32>
    %105 = arith.subf %103, %104 : vector<1x64xf32>
    %cst_56 = arith.constant 0.000000e+00 : f32
    %106 = vector.broadcast %cst_56 : f32 to vector<1x64xf32>
    %107 = arith.maximumf %105, %106 : vector<1x64xf32>
    %108 = vector.broadcast %98 : vector<1x64xf32> to vector<8x64xf32>
    %109 = arith.subf %92, %108 : vector<8x64xf32>
    %cst_57 = arith.constant 1.000000e-03 : f32
    %110 = vector.broadcast %cst_57 : f32 to vector<1x64xf32>
    %111 = arith.addf %107, %110 : vector<1x64xf32>
    %112 = math.rsqrt %111 : vector<1x64xf32>
    %113 = vector.broadcast %112 : vector<1x64xf32> to vector<8x64xf32>
    %114 = arith.mulf %109, %113 : vector<8x64xf32>
    %115 = vector.broadcast %93 : vector<1x64xf32> to vector<8x64xf32>
    %116 = arith.mulf %114, %115 : vector<8x64xf32>
    %117 = vector.broadcast %94 : vector<1x64xf32> to vector<8x64xf32>
    %118 = arith.addf %116, %117 : vector<8x64xf32>
    %cst_58 = arith.constant 0.000000e+00 : f32
    %119 = vector.broadcast %cst_58 : f32 to vector<8x64xf32>
    %120 = arith.cmpf ogt, %118, %119 : vector<8x64xf32>
    %121 = math.exp %118 : vector<8x64xf32>
    %cst_59 = arith.constant 1.000000e+00 : f32
    %122 = vector.broadcast %cst_59 : f32 to vector<8x64xf32>
    %123 = arith.subf %121, %122 : vector<8x64xf32>
    %cst_60 = arith.constant 1.67326319 : f32
    %124 = vector.broadcast %cst_60 : f32 to vector<8x64xf32>
    %125 = arith.mulf %124, %123 : vector<8x64xf32>
    %126 = arith.select %120, %118, %125 : vector<8x64xi1>, vector<8x64xf32>
    %cst_61 = arith.constant 1.05070102 : f32
    %127 = vector.broadcast %cst_61 : f32 to vector<8x64xf32>
    %128 = arith.mulf %127, %126 : vector<8x64xf32>
    %129 = arith.truncf %128 : vector<8x64xf32> to vector<8x64xbf16>
    %c0_62 = arith.constant 0 : index
    %c0_63 = arith.constant 0 : index
    %130 = vector.load %arg16[%c0_62, %c0_63] : memref<8x64xbf16, #tpu.memory_space<vmem>>, vector<8x64xbf16>
    tpu.vector_store %arg16[%c0_62, %c0_63], %129 {strides = array<i32>} : memref<8x64xbf16, #tpu.memory_space<vmem>>, vector<8x64xbf16>,
    return
  }
  func.func @transform_0(%arg0: i32) -> (i32, i32) {
    %c0_i32 = arith.constant 0 : i32
    %c0_i32_0 = arith.constant 0 : i32
    %c0_i32_1 = arith.constant 0 : i32
    return %c0_i32, %c0_i32_0 : i32, i32
  }
  func.func @transform_1(%arg0: i32) -> (i32, i32) {
    %c0_i32 = arith.constant 0 : i32
    %c0_i32_0 = arith.constant 0 : i32
    %c0_i32_1 = arith.constant 0 : i32
    return %c0_i32, %c0_i32_0 : i32, i32
  }
  func.func @transform_2(%arg0: i32) -> (i32, i32) {
    %c0_i32 = arith.constant 0 : i32
    %c0_i32_0 = arith.constant 0 : i32
    %c0_i32_1 = arith.constant 0 : i32
    return %c0_i32, %c0_i32_0 : i32, i32
  }
  func.func @transform_3(%arg0: i32) -> (i32, i32) {
    %c0_i32 = arith.constant 0 : i32
    %c0_i32_0 = arith.constant 0 : i32
    %c0_i32_1 = arith.constant 0 : i32
    return %c0_i32, %c0_i32_0 : i32, i32
  }
  func.func @transform_4(%arg0: i32) -> (i32, i32) {
    %c0_i32 = arith.constant 0 : i32
    %c0_i32_0 = arith.constant 0 : i32
    %c0_i32_1 = arith.constant 0 : i32
    return %c0_i32, %c0_i32_0 : i32, i32
  }
  func.func @transform_5(%arg0: i32) -> (i32, i32) {
    %c0_i32 = arith.constant 0 : i32
    %c0_i32_0 = arith.constant 0 : i32
    %c0_i32_1 = arith.constant 0 : i32
    return %c0_i32, %c0_i32_0 : i32, i32
  }
  func.func @transform_6(%arg0: i32) -> (i32, i32) {
    %c0_i32 = arith.constant 0 : i32
    %c0_i32_0 = arith.constant 0 : i32
    %c0_i32_1 = arith.constant 0 : i32
    return %c0_i32, %c0_i32_0 : i32, i32
  }
  func.func @transform_7(%arg0: i32) -> (i32, i32) {
    %c0_i32 = arith.constant 0 : i32
    %c0_i32_0 = arith.constant 0 : i32
    %c0_i32_1 = arith.constant 0 : i32
    return %c0_i32, %c0_i32_0 : i32, i32
  }
  func.func @transform_8(%arg0: i32) -> (i32, i32) {
    %c0_i32 = arith.constant 0 : i32
    %c0_i32_0 = arith.constant 0 : i32
    %c0_i32_1 = arith.constant 0 : i32
    return %c0_i32, %c0_i32_0 : i32, i32
  }
  func.func @transform_9(%arg0: i32) -> (i32, i32) {
    %c0_i32 = arith.constant 0 : i32
    %c0_i32_0 = arith.constant 0 : i32
    %c0_i32_1 = arith.constant 0 : i32
    return %c0_i32, %c0_i32_0 : i32, i32
  }
  func.func @transform_10(%arg0: i32) -> (i32, i32) {
    %c0_i32 = arith.constant 0 : i32
    %c0_i32_0 = arith.constant 0 : i32
    %c0_i32_1 = arith.constant 0 : i32
    return %c0_i32, %c0_i32_0 : i32, i32
  }
  func.func @transform_11(%arg0: i32) -> (i32, i32) {
    %c0_i32 = arith.constant 0 : i32
    %c0_i32_0 = arith.constant 0 : i32
    %c0_i32_1 = arith.constant 0 : i32
    return %c0_i32, %c0_i32_0 : i32, i32
  }
  func.func @transform_12(%arg0: i32) -> (i32, i32) {
    %c0_i32 = arith.constant 0 : i32
    %c0_i32_0 = arith.constant 0 : i32
    %c0_i32_1 = arith.constant 0 : i32
    return %c0_i32, %c0_i32_0 : i32, i32
  }
  func.func @transform_13(%arg0: i32) -> (i32, i32) {
    %c0_i32 = arith.constant 0 : i32
    %c0_i32_0 = arith.constant 0 : i32
    %c0_i32_1 = arith.constant 0 : i32
    return %c0_i32, %c0_i32_0 : i32, i32
  }
  func.func @transform_14(%arg0: i32) -> (i32, i32) {
    %c0_i32 = arith.constant 0 : i32
    %c0_i32_0 = arith.constant 0 : i32
    %c0_i32_1 = arith.constant 0 : i32
    return %c0_i32, %c0_i32_0 : i32, i32
  }
  func.func @transform_15(%arg0: i32) -> (i32, i32) {
    %c0_i32 = arith.constant 0 : i32
    %c0_i32_0 = arith.constant 0 : i32
    %c0_i32_1 = arith.constant 0 : i32
    return %c0_i32, %c0_i32_0 : i32, i32
  }
}

</mosaic_0001>

<bundles_post_ra>
// kernel: tpu_custom_call.1
= control target key start
LH: loop header
LB: loop body
LE: loop exit
PB: predicated region body
PF: predicated region fallthrough
CT: control target
= control target key end

     0   :  { %20 = vsyncpa [#allocation3], 0  ;;  %s1109_s0 = inlined_call_operand.hbm [shape: f32[8,16], index: 0, kind: input, shape index: {}]   ;;  %s1110_s1 = inlined_call_operand.hbm [shape: f32[8,8], index: 1, kind: input, shape index: {}]   ;;  %s1111_s2 = inlined_call_operand.hbm [shape: f32[8,8], index: 2, kind: input, shape index: {}]   ;;  %s1112_s3 = inlined_call_operand.vmem [shape: f32[1,8], index: 3, kind: input, shape index: {}]   ;;  %s1113_s4 = inlined_call_operand.vmem [shape: f32[1,8], index: 4, kind: input, shape index: {}]   ;;  %s1114_s5 = inlined_call_operand.hbm [shape: f32[1,8], index: 5, kind: input, shape index: {}]   ;;  %s1115_s6 = inlined_call_operand.vmem [shape: f32[16,32], index: 6, kind: input, shape index: {}]   ;;  %s1116_s7 = inlined_call_operand.hbm [shape: f32[8,32], index: 7, kind: input, shape index: {}]   ;;  %s1117_s8 = inlined_call_operand.hbm [shape: f32[1,32], index: 8, kind: input, shape index: {}]   ;;  %s1118_s9 = inlined_call_operand.hbm [shape: f32[1,32], index: 9, kind: input, shape index: {}]   ;;  %s1119_s10 = inlined_call_operand.vmem [shape: f32[1,32], index: 10, kind: input, shape index: {}]   ;;  %s1120_s11 = inlined_call_operand.vmem [shape: bf16[32,64], index: 11, kind: input, shape index: {}]   ;;  %s1121_s12 = inlined_call_operand.vmem [shape: f32[1,64], index: 12, kind: input, shape index: {}]   ;;  %s1122_s13 = inlined_call_operand.vmem [shape: f32[1,64], index: 13, kind: input, shape index: {}]   ;;  %s1123_s14 = inlined_call_operand.vmem [shape: f32[1,64], index: 14, kind: input, shape index: {}]   ;;  %s1124_s15 = inlined_call_operand.hbm [shape: bf16[8,64], index: 15, kind: output, shape index: {}]  }
   0x1   :  { %21 = vsyncpa [#allocation6], 0 }
   0x2   :  { %22 = vsyncpa [#allocation9], 0 }
   0x3   :  { %23 = vsyncpa [#allocation12], 0 }
   0x4   :  { %24 = vsyncpa [#allocation4], 0  ;;  %s873_s18 = smov [#allocation5]   ;;  %s874_s20 = smov [#allocation8]  }
   0x5   :  { %s41_s19 = sshll.u32 %s873_s18, 4  ;;  %s65_s21 = sshll.u32 %s874_s20, 4  ;;  %s42_s19 = int_to_ptr.vmem [resolvable:$true] %s41_s19  ;;  %s66_s21 = int_to_ptr.vmem [resolvable:$true] %s65_s21 }
   0x6   :  { %s687_s24 = scalar_lea.hbm %s1110_s1, 128 }
   0x7   :  { %p688_p0 = scmp.ne.s32.totalorder %s1110_s1, %s687_s24  ;;  %p691_p1 = scmp.lt.u32.totalorder %s687_s24, %s1110_s1 }
   0x9   :  { %p693_p2 = pnand %p691_p1, %p688_p0 }
   0xb   :  { %696 = shalt.err (!%p693_p2)
}
   0xc   :  { %s697_s29 = scalar_lea.vmem %s42_s19, 128  ;;  %p702_p4 = scmp.lt.s32.totalorder %s42_s19, %s42_s19 }
   0xd   :  { %p698_p3 = scmp.ne.s32.totalorder %s42_s19, %s697_s29  ;;  %p703_p5 = scmp.lt.s32.totalorder %s697_s29, %s697_s29 }
   0xf   :  { %p704_p6 = por %p703_p5, %p702_p4 }
  0x11   :  { %p705_p7 = pnand %p704_p6, %p698_p3 }
  0x13   :  { %708 = shalt.err (!%p705_p7)
}
  0x14   :  { %44 = dma.hbm_to_vmem [thread:$0]  %s1110_s1, 128, %s42_s19, [#allocation6]  }
  0x15   :  { %s709_s20 = scalar_lea.hbm %s1114_s5, 16 }
  0x16   :  { %p710_p8 = scmp.ne.s32.totalorder %s1114_s5, %s709_s20  ;;  %p713_p9 = scmp.lt.u32.totalorder %s709_s20, %s1114_s5 }
  0x18   :  { %p715_p10 = pnand %p713_p9, %p710_p8 }
  0x1a   :  { %718 = shalt.err (!%p715_p10)
}
  0x1b   :  { %s719_s26 = scalar_lea.vmem %s66_s21, 16  ;;  %s723_s27 = scalar_lea.vmem %s66_s21, 32 }
  0x1c   :  { %p720_p11 = scmp.ne.s32.totalorder %s66_s21, %s719_s26  ;;  %p724_p12 = scmp.lt.s32.totalorder %s66_s21, %s66_s21 }
  0x1d   :  { %p725_p13 = scmp.lt.s32.totalorder %s723_s27, %s719_s26 }
  0x1f   :  { %p726_p0 = por %p725_p13, %p724_p12 }
  0x21   :  { %p727_p1 = pnand %p726_p0, %p720_p11 }
  0x23   :  { %730 = shalt.err (!%p727_p1)
}
  0x24   :  { %68 = dma.hbm_to_vmem [thread:$0]  %s1114_s5, 16, %s66_s21, [#allocation9]  }
  0x25   :  { %s875_s28 = smov [#allocation11]   ;;  %s876_s30 = smov [#allocation2]  }
  0x26   :  { %s87_s29 = sshll.u32 %s875_s28, 4  ;;  %s31_s16 = sshll.u32 %s876_s30, 4  ;;  %s88_s29 = int_to_ptr.vmem [resolvable:$true] %s87_s29  ;;  %s32_s16 = int_to_ptr.vmem [resolvable:$true] %s31_s16 }
  0x27   :  { %s731_s20 = scalar_lea.hbm %s1117_s8, 16 }
  0x28   :  { %p732_p2 = scmp.ne.s32.totalorder %s1117_s8, %s731_s20  ;;  %p735_p3 = scmp.lt.u32.totalorder %s731_s20, %s1117_s8 }
  0x2a   :  { %p737_p4 = pnand %p735_p3, %p732_p2 }
  0x2c   :  { %740 = shalt.err (!%p737_p4)
}
  0x2d   :  { %s741_s5 = scalar_lea.vmem %s88_s29, 16  ;;  %s745_s21 = scalar_lea.vmem %s88_s29, 32 }
  0x2e   :  { %p742_p5 = scmp.ne.s32.totalorder %s88_s29, %s741_s5  ;;  %p746_p6 = scmp.lt.s32.totalorder %s88_s29, %s88_s29 }
  0x2f   :  { %p747_p7 = scmp.lt.s32.totalorder %s745_s21, %s741_s5 }
  0x31   :  { %p748_p8 = por %p747_p7, %p746_p6 }
  0x33   :  { %p749_p9 = pnand %p748_p8, %p742_p5 }
  0x35   :  { %752 = shalt.err (!%p749_p9)
}
  0x36   :  { %90 = dma.hbm_to_vmem [thread:$0]  %s1117_s8, 16, %s88_s29, [#allocation12]  }
  0x37   :  { %s753_s28 = scalar_lea.hbm %s1109_s0, 128 }
  0x38   :  { %p754_p10 = scmp.ne.s32.totalorder %s1109_s0, %s753_s28  ;;  %p757_p11 = scmp.lt.u32.totalorder %s753_s28, %s1109_s0 }
  0x3a   :  { %p759_p12 = pnand %p757_p11, %p754_p10 }
  0x3c   :  { %762 = shalt.err (!%p759_p12)
}
  0x3d   :  { %s763_s22 = scalar_lea.vmem %s32_s16, 128  ;;  %p768_p0 = scmp.lt.s32.totalorder %s32_s16, %s32_s16 }
  0x3e   :  { %p764_p13 = scmp.ne.s32.totalorder %s32_s16, %s763_s22  ;;  %p769_p1 = scmp.lt.s32.totalorder %s763_s22, %s763_s22 }
  0x40   :  { %p770_p2 = por %p769_p1, %p768_p0 }
  0x42   :  { %p771_p3 = pnand %p770_p2, %p764_p13 }
  0x44   :  { %774 = shalt.err (!%p771_p3)
}
  0x45   :  { %34 = dma.hbm_to_vmem [thread:$0]  %s1109_s0, 128, %s32_s16, [#allocation3]  }
  0x46   :  { %s877_s23 = smov [#allocation7]   ;;  %s878_s25 = smov [#allocation10]  }
  0x47   :  { %s51_s24 = sshll.u32 %s877_s23, 4  ;;  %s77_s5 = sshll.u32 %s878_s25, 4  ;;  %s52_s24 = int_to_ptr.vmem [resolvable:$true] %s51_s24  ;;  %s78_s5 = int_to_ptr.vmem [resolvable:$true] %s77_s5 }
  0x48   :  { %s775_s27 = scalar_lea.hbm %s1111_s2, 128 }
  0x49   :  { %p776_p4 = scmp.ne.s32.totalorder %s1111_s2, %s775_s27  ;;  %p779_p5 = scmp.lt.u32.totalorder %s775_s27, %s1111_s2 }
  0x4b   :  { %p781_p6 = pnand %p779_p5, %p776_p4 }
  0x4d   :  { %784 = shalt.err (!%p781_p6)
}
  0x4e   :  { %s785_s0 = scalar_lea.vmem %s52_s24, 128  ;;  %p790_p8 = scmp.lt.s32.totalorder %s52_s24, %s52_s24 }
  0x4f   :  { %p786_p7 = scmp.ne.s32.totalorder %s52_s24, %s785_s0  ;;  %p791_p9 = scmp.lt.s32.totalorder %s785_s0, %s785_s0 }
  0x51   :  { %p792_p10 = por %p791_p9, %p790_p8 }
  0x53   :  { %p793_p11 = pnand %p792_p10, %p786_p7 }
  0x55   :  { %796 = shalt.err (!%p793_p11)
}
  0x56   :  { %54 = dma.hbm_to_vmem [thread:$0]  %s1111_s2, 128, %s52_s24, [#allocation6]  }
  0x57   :  { %s797_s22 = scalar_lea.hbm %s1116_s7, 128 }
  0x58   :  { %p798_p12 = scmp.ne.s32.totalorder %s1116_s7, %s797_s22  ;;  %p801_p13 = scmp.lt.u32.totalorder %s797_s22, %s1116_s7 }
  0x5a   :  { %p803_p0 = pnand %p801_p13, %p798_p12 }
  0x5c   :  { %806 = shalt.err (!%p803_p0)
}
  0x5d   :  { %s807_s21 = scalar_lea.vmem %s78_s5, 128  ;;  %p812_p2 = scmp.lt.s32.totalorder %s78_s5, %s78_s5 }
  0x5e   :  { %p808_p1 = scmp.ne.s32.totalorder %s78_s5, %s807_s21  ;;  %p813_p3 = scmp.lt.s32.totalorder %s807_s21, %s807_s21 }
  0x60   :  { %p814_p4 = por %p813_p3, %p812_p2 }
  0x62   :  { %p815_p5 = pnand %p814_p4, %p808_p1 }
  0x64   :  { %818 = shalt.err (!%p815_p5)
}
  0x65   :  { %80 = dma.hbm_to_vmem [thread:$0]  %s1116_s7, 128, %s78_s5, [#allocation9]  }
  0x66   :  { %s879_s26 = smov [#allocation13]   ;;  %s819_s28 = scalar_lea.hbm %s1118_s9, 16 }
  0x67   :  { %s97_s27 = sshll.u32 %s879_s26, 4  ;;  %p820_p6 = scmp.ne.s32.totalorder %s1118_s9, %s819_s28  ;;  %s98_s27 = int_to_ptr.vmem [resolvable:$true] %s97_s27 }
  0x68   :  { %p823_p7 = scmp.lt.u32.totalorder %s819_s28, %s1118_s9 }
  0x6a   :  { %p825_p8 = pnand %p823_p7, %p820_p6 }
  0x6c   :  { %828 = shalt.err (!%p825_p8)
}
  0x6d   :  { %s829_s18 = scalar_lea.vmem %s98_s27, 16  ;;  %s833_s7 = scalar_lea.vmem %s98_s27, 32 }
  0x6e   :  { %p830_p9 = scmp.ne.s32.totalorder %s98_s27, %s829_s18  ;;  %p834_p10 = scmp.lt.s32.totalorder %s98_s27, %s98_s27 }
  0x6f   :  { %p835_p11 = scmp.lt.s32.totalorder %s833_s7, %s829_s18 }
  0x71   :  { %p836_p12 = por %p835_p11, %p834_p10 }
  0x73   :  { %p837_p13 = pnand %p836_p12, %p830_p9 }
  0x75   :  { %840 = shalt.err (!%p837_p13)
}
  0x76   :  { %100 = dma.hbm_to_vmem [thread:$0]  %s1118_s9, 16, %s98_s27, [#allocation12]  }
  0x77   :  { %863 = dma.done.wait [#allocation3], 128  }
  0x78   :  { %864 = vsyncadd [#allocation3], 4294967168 }
  0x79   :  { %865 = dma.done.wait [#allocation6], 256  }
  0x7a   :  { %866 = vsyncadd [#allocation6], 4294967040 }
  0x7b   :  { %867 = dma.done.wait [#allocation9], 144  }
  0x7c   :  { %868 = vsyncadd [#allocation9], 4294967152 }
  0x7d   :  { %869 = dma.done.wait [#allocation12], 32  }
  0x7e   :  { %870 = vsyncadd [#allocation12], 4294967264  ;;  %v880_v0 = vmov 0.0   ;;  %vm881_vm0 = vmmov 0   ;;  %vm142_vm1 = vcmask 64512   ;;  %v134_v1 = vld [vmem:[#allocation7] sm:$0xff] }
  0x7f   :  { %634 = vmatprep.subr.mxu0 %v880_v0  ;;  %636 = vmatprep.mubr.msk.f32.mxu0 %vm881_vm0, %v880_v0  ;;  %v133_v2 = vld [vmem:[#allocation5] sm:$0xff]  ;;  %v266_v3 = vld [vmem:[#allocation10] sm:$0xff]  ;;  %v882_v4 = vmov 0.0|0.0   ;;  %v609_v34 = vld [vmem:[#allocation8] ss:$0 sm:$0xff]  ;;  %vm340_vm3 = vcmask 130048  }
  0x80   :  { %651 = vmatprep.subr.bf16.mxu1 %v880_v0  ;;  %655 = vmatprep.mubr.msk.bf16.mxu1 %vm881_vm0, %v880_v0  ;;  %v606_v5 = vld [vmem:[%s1112_s3] ss:$0 sm:$0xff]  ;;  %v265_v41 = vld [vmem:[%s1115_s6 + $0x8] sm:$0xff]  ;;  %v613_v52 = vld [vmem:[#allocation11] ss:$0 sm:$0xff]  ;;  %vm424_vm4 = vcmask 261120  }
  0x81   :  { %635 = vmatpush3.msra.mxu0 %v134_v1  ;;  %v608_v32 = vld [vmem:[%s1113_s4] ss:$0 sm:$0xff]  ;;  %v674_v48 = vld [vmem:[%s1120_s11 + $0x8] sm:$0xff]   ;;  %vm539_vm6 = vcmask 523264   ;;  %s883_s30 = smov [#allocation14]   ;;  %vm586_vm8 = vcmask 519168  }
  0x82   :  { %637 = vmatmul.mubr.msk.f32.vlgmr.msra.gmra.mrb[0].mxu0 %vm142_vm1, %v133_v2  ;;  %639 = vmatprep.subr.mxu0 %v880_v0  ;;  %v264_v40 = vld [vmem:[%s1115_s6] sm:$0xff]  ;;  %s594_s0 = sshll.u32 %s883_s30, 4  ;;  %s595_s0 = int_to_ptr.vmem [resolvable:$true] %s594_s0 }
  0x83   :  { %641 = vmatprep.mubr.msk.f32.mxu0 %vm881_vm0, %v880_v0  ;;  %640 = vmatpush3.msra.mxu0 %v266_v3  ;;  %v660_v44 = vpack.c.bf16 %v265_v41, %v264_v40  ;;  %v263_v46 = vld [vmem:[#allocation2] sm:$0xff]  ;;  %p846_p1 = scmp.lt.s32.totalorder %s595_s0, %s595_s0 }
  0x84   :  { %659 = vmatprep.subr.bf16.mxu0 %v882_v4  ;;  %v673_v47 = vld [vmem:[%s1120_s11] sm:$0xff]  }
  0x85   :  { %652 = vmatpush3.bf16.msra.mxu1 %v673_v47 }
  0x86   :  { %653 = vmatprep.subr.bf16.mxu1 %v880_v0 }
  0x89   :  { %654 = vmatpush3.bf16.msra.mxu1 %v674_v48 }
 0x155   :  { %v212_v6 = vpop.f32.mrb[0].mxu0 }
 0x156   :  { %v213_v7 = vadd.f32 %v606_v5, %v212_v6  ;;  %v638_v8 = vpop.f32.mrb[1].mxu0 }
 0x158   :  { %v218_v9 = vsel %vm142_vm1, %v213_v7, 0.0  ;;  %v226_v10 = vmul.f32 %v213_v7, %v213_v7 }
 0x159   :  { %v219_v11 = vrot.slane %v218_v9, 4 }
 0x15a   :  { %v227_v12 = vsel %vm142_vm1, %v226_v10, 0.0 }
 0x15b   :  { %v220_v13 = vadd.f32 %v219_v11, %v218_v9  ;;  %v228_v14 = vrot.slane %v227_v12, 4 }
 0x15d   :  { %v221_v15 = vrot.slane %v220_v13, 2  ;;  %v229_v16 = vadd.f32 %v228_v14, %v227_v12 }
 0x15f   :  { %v222_v17 = vadd.f32 %v221_v15, %v220_v13  ;;  %v230_v18 = vrot.slane %v229_v16, 2  ;;  %v614_v15 = vld [vmem:[#allocation13] ss:$0 sm:$0xff] }
 0x161   :  { %v223_v19 = vrot.slane %v222_v17, 1  ;;  %v231_v20 = vadd.f32 %v230_v18, %v229_v16 }
 0x163   :  { %v224_v21 = vadd.f32 %v223_v19, %v222_v17  ;;  %v232_v22 = vrot.slane %v231_v20, 1  ;;  %v615_v17 = vld [vmem:[%s1119_s10] ss:$0 sm:$0xff] }
 0x165   :  { %v225_v23 = vmul.f32 0.125, %v224_v21  ;;  %v233_v24 = vadd.f32 %v232_v22, %v231_v20 }
 0x167   :  { %v234_v25 = vmul.f32 0.125, %v233_v24  ;;  %v235_v26 = vmul.f32 %v225_v23, %v225_v23  ;;  %v238_v30 = vsub.f32 %v213_v7, %v225_v23 }
 0x169   :  { %v236_v27 = vsub.f32 %v234_v25, %v235_v26 }
 0x16b   :  { %v237_v28 = vmax.f32 %v236_v27, 0.0  ;;  %v617_v27 = vld [vmem:[%s1121_s12] ss:$0 sm:$0xff] }
 0x16d   :  { %v239_v29 = vadd.f32 0.001, %v237_v28 }
 0x16f   :  { %675 = vrsqrt.f32 %v239_v29 }
 0x179   :  { %v676_v31 = vpop.eup %675 }
 0x17a   :  { %v241_v33 = vmul.f32 %v676_v31, %v238_v30 }
 0x17c   :  { %v248_v35 = vmul.f32 %v608_v32, %v241_v33 }
 0x17e   :  { %v255_v36 = vadd.f32 %v609_v34, %v248_v35 }
 0x180   :  { %v257_v37 = vmul.f32 1.442695, %v255_v36  ;;  %vm256_vm2 = vcmp.gt.f32.partialorder %v255_v36, 0.0 }
 0x182   :  { %677 = vpow2.f32 %v257_v37 }
 0x18c   :  { %v678_v38 = vpop.eup %677 }
 0x18d   :  { %v610_v39 = vadd.f32 -1.0, %v678_v38 }
 0x18f   :  { %v260_v42 = vmul.f32 1.6732632, %v610_v39 }
 0x191   :  { %v261_v43 = vsel %vm256_vm2, %v255_v36, %v260_v42 }
 0x192   :  { %v262_v45 = vmul.f32 1.050701, %v261_v43 }
 0x194   :  { %642 = vmatmul.mubr.msk.f32.vlgmr.msra.gmra.mrb[2].mxu0 %vm142_vm1, %v262_v45 }
 0x195   :  { %661 = vmatpush3.bf16.msra.mxu0 %v660_v44  ;;  %648 = vmatprep.mubr.msk.f32.mxu0 %vm881_vm0, %v880_v0 }
 0x198   :  { %649 = vmatmul.mubr.msk.f32.vlgmr.msra.gmra.mrb[4].mxu0 %vm340_vm3, %v263_v46 }
 0x267   :  { %v336_v49 = vpop.f32.mrb[2].mxu0 }
 0x268   :  { %v643_v50 = vpop.f32.mrb[3].mxu0 }
 0x26b   :  { %v410_v51 = vpop.f32.mrb[4].mxu0 }
 0x26c   :  { %v411_v53 = vadd.f32 %v410_v51, %v336_v49  ;;  %v650_v54 = vpop.f32.mrb[5].mxu0 }
 0x26e   :  { %v421_v55 = vadd.f32 %v613_v52, %v411_v53 }
 0x270   :  { %v433_v56 = vmul.f32 %v421_v55, %v421_v55  ;;  %v425_v57 = vsel %vm424_vm4, %v421_v55, 0.0 }
 0x271   :  { %v426_v58 = vrot.slane %v425_v57, 4 }
 0x272   :  { %v434_v59 = vsel %vm424_vm4, %v433_v56, 0.0  ;;  %v621_v56 = vld [vmem:[%s1122_s13] ss:$0 sm:$0xff]  ;;  %s841_s13 = scalar_lea.vmem %s595_s0, 64 }
 0x273   :  { %v427_v60 = vadd.f32 %v426_v58, %v425_v57  ;;  %v435_v61 = vrot.slane %v434_v59, 4  ;;  %v622_v58 = vld [vmem:[%s1123_s14] ss:$0 sm:$0xff]  ;;  %p842_p0 = scmp.ne.s32.totalorder %s595_s0, %s841_s13  ;;  %p847_p2 = scmp.lt.s32.totalorder %s841_s13, %s841_s13 }
 0x275   :  { %v428_v62 = vrot.slane %v427_v60, 2  ;;  %v436_v63 = vadd.f32 %v435_v61, %v434_v59  ;;  %p848_p3 = por %p847_p2, %p846_p1 }
 0x277   :  { %v429_v0 = vadd.f32 %v428_v62, %v427_v60  ;;  %v437_v1 = vrot.slane %v436_v63, 2  ;;  %p849_p4 = pnand %p848_p3, %p842_p0 }
 0x279   :  { %v430_v2 = vrot.slane %v429_v0, 1  ;;  %v438_v3 = vadd.f32 %v437_v1, %v436_v63 }
 0x27b   :  { %v431_v4 = vadd.f32 %v430_v2, %v429_v0  ;;  %v439_v5 = vrot.slane %v438_v3, 1 }
 0x27d   :  { %v432_v6 = vmul.f32 0.125, %v431_v4  ;;  %v440_v7 = vadd.f32 %v439_v5, %v438_v3 }
 0x27f   :  { %v441_v8 = vmul.f32 0.125, %v440_v7  ;;  %v442_v9 = vmul.f32 %v432_v6, %v432_v6  ;;  %v445_v13 = vsub.f32 %v421_v55, %v432_v6 }
 0x281   :  { %v443_v10 = vsub.f32 %v441_v8, %v442_v9 }
 0x283   :  { %v444_v11 = vmax.f32 %v443_v10, 0.0 }
 0x285   :  { %v446_v12 = vadd.f32 0.001, %v444_v11 }
 0x287   :  { %679 = vrsqrt.f32 %v446_v12 }
 0x291   :  { %v680_v14 = vpop.eup %679 }
 0x292   :  { %v448_v16 = vmul.f32 %v680_v14, %v445_v13 }
 0x294   :  { %v455_v18 = vmul.f32 %v614_v15, %v448_v16 }
 0x296   :  { %v462_v19 = vadd.f32 %v615_v17, %v455_v18 }
 0x298   :  { %v464_v20 = vmul.f32 1.442695, %v462_v19  ;;  %vm463_vm5 = vcmp.gt.f32.partialorder %v462_v19, 0.0 }
 0x29a   :  { %681 = vpow2.f32 %v464_v20 }
 0x2a4   :  { %v682_v21 = vpop.eup %681 }
 0x2a5   :  { %v616_v22 = vadd.f32 -1.0, %v682_v21 }
 0x2a7   :  { %v467_v23 = vmul.f32 1.6732632, %v616_v22 }
 0x2a9   :  { %v468_v24 = vsel %vm463_vm5, %v462_v19, %v467_v23 }
 0x2aa   :  { %v469_v25 = vmul.f32 1.050701, %v468_v24 }
 0x2ac   :  { %v470_v26 = vpack.c.bf16 %v469_v25, %v469_v25 }
 0x2ae   :  { %656 = vmatmul.mubr.msk.bf16.vlgmr.msra.gmra.mrb[0].mxu1 %vm424_vm4, %v470_v26 }
 0x381   :  { %v531_v28 = vpop.f32.mrb[0].mxu1 }
 0x382   :  { %v532_v29 = vadd.f32 %v617_v27, %v531_v28  ;;  %v657_v30 = vpop.f32.mrb[1].mxu1 }
 0x383   :  { %v534_v31 = vpop.f32.mrb[2].mxu1 }
 0x384   :  { %v540_v32 = vsel %vm539_vm6, %v532_v29, 0.0  ;;  %v548_v33 = vmul.f32 %v532_v29, %v532_v29  ;;  %v658_v34 = vpop.f32.mrb[3].mxu1 }
 0x385   :  { %v541_v35 = vrot.slane %v540_v32, 4 }
 0x386   :  { %v549_v36 = vsel %vm539_vm6, %v548_v33, 0.0 }
 0x387   :  { %v542_v37 = vadd.f32 %v541_v35, %v540_v32  ;;  %v550_v38 = vrot.slane %v549_v36, 4 }
 0x389   :  { %v543_v39 = vrot.slane %v542_v37, 2  ;;  %v551_v40 = vadd.f32 %v550_v38, %v549_v36 }
 0x38b   :  { %v544_v41 = vadd.f32 %v543_v39, %v542_v37  ;;  %v552_v42 = vrot.slane %v551_v40, 2 }
 0x38d   :  { %v545_v43 = vrot.slane %v544_v41, 1  ;;  %v553_v44 = vadd.f32 %v552_v42, %v551_v40 }
 0x38f   :  { %v546_v45 = vadd.f32 %v545_v43, %v544_v41  ;;  %v554_v46 = vrot.slane %v553_v44, 1 }
 0x391   :  { %v547_v47 = vmul.f32 0.125, %v546_v45  ;;  %v555_v48 = vadd.f32 %v554_v46, %v553_v44 }
 0x393   :  { %v556_v49 = vmul.f32 0.125, %v555_v48  ;;  %v557_v50 = vmul.f32 %v547_v47, %v547_v47  ;;  %v560_v54 = vsub.f32 %v532_v29, %v547_v47 }
 0x395   :  { %v558_v51 = vsub.f32 %v556_v49, %v557_v50 }
 0x397   :  { %v559_v52 = vmax.f32 %v558_v51, 0.0 }
 0x399   :  { %v561_v53 = vadd.f32 0.001, %v559_v52 }
 0x39b   :  { %683 = vrsqrt.f32 %v561_v53 }
 0x3a5   :  { %v684_v55 = vpop.eup %683 }
 0x3a6   :  { %v563_v57 = vmul.f32 %v684_v55, %v560_v54 }
 0x3a8   :  { %v570_v59 = vmul.f32 %v621_v56, %v563_v57 }
 0x3aa   :  { %v577_v60 = vadd.f32 %v622_v58, %v570_v59 }
 0x3ac   :  { %v579_v61 = vmul.f32 1.442695, %v577_v60  ;;  %vm578_vm7 = vcmp.gt.f32.partialorder %v577_v60, 0.0 }
 0x3ae   :  { %685 = vpow2.f32 %v579_v61 }
 0x3b8   :  { %v686_v62 = vpop.eup %685 }
 0x3b9   :  { %v623_v63 = vadd.f32 -1.0, %v686_v62 }
 0x3bb   :  { %v582_v0 = vmul.f32 1.6732632, %v623_v63 }
 0x3bd   :  { %v583_v1 = vsel %vm578_vm7, %v577_v60, %v582_v0 }
 0x3be   :  { %v584_v2 = vmul.f32 1.050701, %v583_v1 }
 0x3c0   :  { %v585_v3 = vpack.c.bf16 %v584_v2, %v584_v2 }
 0x3c2   :  { %587 = vst.msk [vmem:[#allocation14] sm:$0xf] %vm586_vm8, %v585_v3 }
 0x3c3   :  { %852 = shalt.err (!%p849_p4)
}
 0x3c4   :  { %s853_s17 = scalar_lea.hbm %s1124_s15, 64 }
 0x3c5   :  { %p854_p5 = scmp.ne.s32.totalorder %s1124_s15, %s853_s17  ;;  %p857_p6 = scmp.lt.u32.totalorder %s853_s17, %s1124_s15 }
 0x3c7   :  { %p859_p7 = pnand %p857_p6, %p854_p5 }
 0x3c9   :  { %862 = shalt.err (!%p859_p7)
}
 0x3ca   :  { %597 = dma.vmem_to_hbm [thread:$0]  %s595_s0, 64, %s1124_s15, [#allocation4]  }
 0x3cb   :  { %871 = dma.done.wait [#allocation4], 64  }
 0x3cc   :  { %872 = vsyncadd [#allocation4], 4294967232 }
 0x3cd   :  { %601 = vsyncpa [#allocation3], 1 }
 0x3ce   :  { %602 = vsyncpa [#allocation6], 1 }
 0x3cf   :  { %603 = vsyncpa [#allocation9], 1 }
 0x3d0   :  { %604 = vsyncpa [#allocation12], 1 }
 0x3d1   :  { %605 = vsyncpa [#allocation4], 1 }

</bundles_post_ra>
